<compile_context>
chip_gen: v7x
topology: tpu7x:2x2x1
jax: 0.10.0
libtpu: 0.0.40
codegen_flags: <defaults>
</compile_context>

<pallas_src>
import functools

import jax
import jax.numpy as jnp
from jax import lax
from jax.experimental import pallas as pl
from jax.experimental.pallas import tpu as pltpu


def _round_up(x, n):
    return ((x + n - 1) // n) * n


# ----------------------------------------------------------------------------
# Kernel: layer-0 from batch-major inputs -> feature-major activations,
# fused block-diagonal hidden/output layers, sublane-reduce dot product,
# scalar bias, lane-dense (1, TB) store.
# ----------------------------------------------------------------------------
def _pideeponet_kernel(xf_ref, xl_ref, w0f_ref, w0l_ref, wslab_ref, bslab_ref,
                       bsc_ref, out_ref, *, n_layers, p):
    # xf_ref:    (TB, m_p)          batch-major branch input tile
    # xl_ref:    (TB, d_p)          batch-major trunk input tile
    # w0f_ref:   (FEAT, m_p)        layer-0 branch weights (rows [0:ob0])
    # w0l_ref:   (FEAT, d_p)        layer-0 trunk weights (rows [ob0:ob0+ot0])
    # wslab_ref: (L-1, FEAT, FEAT)  block-diagonal fused weights, layers 1..L-1
    # bslab_ref: (L, FEAT, 1)       fused bias columns (f32)
    # bsc_ref:   (1, 1)             scalar parameter b (SMEM, f32)
    # out_ref:   (1, TB)            lane-dense result row (f32)
    f32 = jnp.float32
    dn = (((1,), (1,)), ((), ()))       # contract last dims: (F,K)x(TB,K)->(F,TB)

    # Layer 0: (FEAT, TB) feature-major activations directly from batch-major x.
    h = (lax.dot_general(w0f_ref[...], xf_ref[...], dn, preferred_element_type=f32)
         + lax.dot_general(w0l_ref[...], xl_ref[...], dn, preferred_element_type=f32)
         + bslab_ref[0])
    h = jnp.maximum(h, 0.0)

    # Layers 1..L-1: fused block-diagonal matmuls (static unroll).
    for i in range(1, n_layers):
        w = wslab_ref[i - 1]
        h = jnp.dot(w, h.astype(w.dtype), preferred_element_type=f32) + bslab_ref[i]
        if i < n_layers - 1:
            h = jnp.maximum(h, 0.0)

    # rows [0:p] = branch output, rows [p:2p] = trunk output (f32 epilogue).
    prod = h[:p, :] * h[p:2 * p, :]                       # (p, TB)
    out_ref[...] = jnp.sum(prod, axis=0, keepdims=True) + bsc_ref[0, 0]


# ----------------------------------------------------------------------------
# Parameter packing.
#   * layer 0: separate (FEAT, m_p) / (FEAT, d_p) weights (m_p/d_p = round_up to 8)
#   * layers 1..L-1: block-diagonal (L-1, FEAT, FEAT) slab
#   * all biases: (L, FEAT, 1) slab (kept f32)
# Weights stay in PyTorch (out, in) layout.
# ----------------------------------------------------------------------------
def pack_deeponet_params(branch_params, trunk_params, dtype=jnp.bfloat16):
    assert len(branch_params) == len(trunk_params)
    L = len(branch_params)
    assert L >= 2, "need at least one hidden layer"

    out_dims = [bw.shape[0] + tw.shape[0]
                for (bw, _), (tw, _) in zip(branch_params, trunk_params)]
    FEAT = max(_round_up(max(out_dims), 8), 8)

    p = branch_params[-1][0].shape[0]
    assert trunk_params[-1][0].shape[0] == p, "branch/trunk final widths must match"
    assert FEAT >= 2 * p

    bw0, bb0 = branch_params[0]
    tw0, tb0 = trunk_params[0]
    ob0, m = bw0.shape
    ot0, d = tw0.shape
    m_p, d_p = _round_up(m, 8), _round_up(d, 8)

    w0f = jnp.zeros((FEAT, m_p), jnp.float32).at[:ob0, :m].set(bw0)
    w0l = jnp.zeros((FEAT, d_p), jnp.float32).at[ob0:ob0 + ot0, :d].set(tw0)

    w_slab = jnp.zeros((L - 1, FEAT, FEAT), jnp.float32)
    b_slab = jnp.zeros((L, FEAT, 1), jnp.float32)
    b_slab = b_slab.at[0, :ob0, 0].set(bb0).at[0, ob0:ob0 + ot0, 0].set(tb0)

    prev_b, prev_t = ob0, ot0
    for i in range(1, L):
        (bw, bb), (tw, tb) = branch_params[i], trunk_params[i]
        ob, ib = bw.shape
        ot, it = tw.shape
        assert ib == prev_b and it == prev_t
        w_slab = w_slab.at[i - 1, :ob, :ib].set(bw)
        w_slab = w_slab.at[i - 1, ob:ob + ot, ib:ib + it].set(tw)
        b_slab = b_slab.at[i, :ob, 0].set(bb).at[i, ob:ob + ot, 0].set(tb)
        prev_b, prev_t = ob, ot

    # MXU operands in `dtype` (bf16 for v6e/v7x + v5e MXU); biases stay f32.
    return (w0f.astype(dtype), w0l.astype(dtype), w_slab.astype(dtype),
            b_slab, FEAT, p)


def _batch_tiling(B):
    # TB: multiple of 128 (lane-dense output row, no masked stores), capped at
    # 2048 to amortize per-step pipeline overhead while staying far under VMEM
    # limits.  Grid always has >= 2 steps so ("parallel",) shards across both
    # v7x TensorCores.
    Bp128 = max(_round_up(B, 128), 256)
    TB = min(2048, _round_up(Bp128 // 2, 128))
    Bp = _round_up(Bp128, TB)
    return TB, Bp


def _pad_or_cast(x, rows, cols, dtype):
    B, C = x.shape
    if (B, C) == (rows, cols):
        return x.astype(dtype)               # no copy if dtype already matches
    out = jnp.zeros((rows, cols), dtype)
    return out.at[:B, :C].set(x.astype(dtype))


# ----------------------------------------------------------------------------
# Wrapper.
# ----------------------------------------------------------------------------
def pideeponet_forward(x_func, x_loc, w0f, w0l, w_slab, b_slab, b_scalar, *, p):
    B, m = x_func.shape
    B2, d = x_loc.shape
    assert B == B2
    FEAT, m_p = w0f.shape
    FEAT2, d_p = w0l.shape
    Lm1 = w_slab.shape[0]
    L = Lm1 + 1
    assert FEAT == FEAT2 and w_slab.shape[1:] == (FEAT, FEAT)
    assert b_slab.shape == (L, FEAT, 1)
    assert FEAT >= 2 * p
    dtype = w0f.dtype

    TB, Bp = _batch_tiling(B)
    assert Bp % TB == 0 and TB % 128 == 0

    # Only the batch (and tiny trunk-width) padding ever forces a copy; for
    # B % TB == 0 and matching dtype the branch input is passed straight through.
    xf = _pad_or_cast(x_func, Bp, m_p, dtype)
    xl = _pad_or_cast(x_loc, Bp, d_p, dtype)

    kernel = functools.partial(_pideeponet_kernel, n_layers=L, p=p)
    grid = (Bp // TB,)

    out = pl.pallas_call(
        kernel,
        out_shape=jax.ShapeDtypeStruct((1, Bp), jnp.float32),
        grid_spec=pltpu.PrefetchScalarGridSpec(
            num_scalar_prefetch=0,
            grid=grid,
            in_specs=[
                # Streamed, batch-tiled inputs.  (If xprof ever shows these
                # DMAs exposed, add pipeline_mode=pl.Buffered(3) here.)
                pl.BlockSpec((TB, m_p), lambda i: (i, 0)),
                pl.BlockSpec((TB, d_p), lambda i: (i, 0)),
                # VMEM-resident parameters (constant index_map -> one DMA).
                pl.BlockSpec((FEAT, m_p), lambda i: (0, 0)),
                pl.BlockSpec((FEAT, d_p), lambda i: (0, 0)),
                pl.BlockSpec((Lm1, FEAT, FEAT), lambda i: (0, 0, 0)),
                pl.BlockSpec((L, FEAT, 1), lambda i: (0, 0, 0)),
                pl.BlockSpec(memory_space=pltpu.MemorySpace.SMEM),   # scalar b
            ],
            out_specs=pl.BlockSpec((1, TB), lambda i: (0, i)),       # lane-dense
        ),
        compiler_params=pltpu.CompilerParams(
            dimension_semantics=("parallel",),
        ),
    )(xf, xl, w0f, w0l, w_slab, b_slab, b_scalar)
    return out[0, :B]                                    # (B,) — matches torch


# ----------------------------------------------------------------------------
# Deterministic parameter construction (mirrors nn.Linear + xavier_uniform_).
# ----------------------------------------------------------------------------
def _xavier_uniform(key, fan_out, fan_in):
    bound = (6.0 / (fan_in + fan_out)) ** 0.5
    return jax.random.uniform(key, (fan_out, fan_in), jnp.float32, -bound, bound)


def make_fnn_params(key, layers):
    params = []
    for i in range(len(layers) - 1):
        key, sub = jax.random.split(key)
        w = _xavier_uniform(sub, layers[i + 1], layers[i])   # (out, in)
        b = jnp.zeros((layers[i + 1],), jnp.float32)         # zeros_ init
        params.append((w, b))
    return params, key


# ----------------------------------------------------------------------------
# Pure-JAX reference for correctness checking.
# ----------------------------------------------------------------------------
def _ref_forward(x_func, x_loc, branch_params, trunk_params, b_scalar):
    def mlp(x, params):
        for i, (w, bias) in enumerate(params):
            x = x @ w.T + bias
            if i < len(params) - 1:
                x = jnp.maximum(x, 0.0)
        return x

    hf = mlp(x_func, branch_params)
    hl = mlp(x_loc, trunk_params)
    return jnp.einsum('bi,bi->b', hf, hl) + b_scalar[0, 0]


if __name__ == "__main__":
    key = jax.random.PRNGKey(0)

    # Small DeepONet config: branch sees m=16 sensor values, trunk sees a
    # d=2 coordinate, both map to a p=32 latent basis; batch B=8.
    B, m, d, hidden, p = 8, 16, 2, 32, 32
    branch_layers = [m, hidden, hidden, p]
    trunk_layers = [d, hidden, hidden, p]

    branch_params, key = make_fnn_params(key, branch_layers)
    trunk_params, key = make_fnn_params(key, trunk_layers)
    b_scalar = jnp.zeros((1, 1), jnp.float32)       # Parameter(torch.tensor(0.0))

    key, k1, k2 = jax.random.split(key, 3)
    x_func = jax.random.normal(k1, (B, m), jnp.float32)
    x_loc = jax.random.normal(k2, (B, d), jnp.float32)

    ref = _ref_forward(x_func, x_loc, branch_params, trunk_params, b_scalar)

    # 1) f32 parameters: tight check of packing / fused-kernel semantics.
    w0f, w0l, w_slab, b_slab, FEAT, p_out = pack_deeponet_params(
        branch_params, trunk_params, dtype=jnp.float32)
    out32 = pideeponet_forward(x_func, x_loc, w0f, w0l, w_slab, b_slab,
                               b_scalar, p=p_out)
    out32 = jax.block_until_ready(out32)
    assert out32.shape == (B,)
    assert jnp.allclose(out32, ref, atol=1e-3, rtol=1e-3), (out32, ref)

    # 2) bf16 MXU operands (the perf configuration for v5e/v6e/v7x).
    w0f, w0l, w_slab, b_slab, FEAT, p_out = pack_deeponet_params(
        branch_params, trunk_params, dtype=jnp.bfloat16)
    out16 = pideeponet_forward(x_func, x_loc, w0f, w0l, w_slab, b_slab,
                               b_scalar, p=p_out)
    out16 = jax.block_until_ready(out16)
    assert out16.shape == (B,)
    assert jnp.allclose(out16, ref, atol=5e-2, rtol=5e-2), (out16, ref)

    print("KERNEL_OK")
</pallas_src>

<mosaic_0001>
module attributes {stable_mosaic.version = 11 : i64} {
  func.func @_pideeponet_kernel(%arg0: i32, %arg1: memref<128x16xf32, #tpu.memory_space<vmem>>, %arg2: memref<128x8xf32, #tpu.memory_space<vmem>>, %arg3: memref<64x16xf32, #tpu.memory_space<vmem>>, %arg4: memref<64x8xf32, #tpu.memory_space<vmem>>, %arg5: memref<2x64x64xf32, #tpu.memory_space<vmem>>, %arg6: memref<3x64x1xf32, #tpu.memory_space<vmem>>, %arg7: memref<1x1xf32, #tpu.memory_space<smem>>, %arg8: memref<1x128xf32, #tpu.memory_space<vmem>>) attributes {dimension_semantics = [#tpu.dimension_semantics<parallel>], iteration_bounds = array<i64: 2>, scalar_prefetch = 0 : i64, scratch_operands = 0 : i64, tpu.core_type = #tpu.core_type<tc>, window_params = [{transform_indices = @transform_0, window_bounds = array<i64: 128, 16>}, {transform_indices = @transform_1, window_bounds = array<i64: 128, 8>}, {pipeline_mode = #tpu.pipeline_mode<synchronous>, transform_indices = @transform_2, window_bounds = array<i64: 64, 16>}, {pipeline_mode = #tpu.pipeline_mode<synchronous>, transform_indices = @transform_3, window_bounds = array<i64: 64, 8>}, {pipeline_mode = #tpu.pipeline_mode<synchronous>, transform_indices = @transform_4, window_bounds = array<i64: 2, 64, 64>}, {pipeline_mode = #tpu.pipeline_mode<synchronous>, transform_indices = @transform_5, window_bounds = array<i64: 3, 64, 1>}, {transform_indices = @transform_6, window_bounds = array<i64: 1, 1>}, {transform_indices = @transform_7, window_bounds = array<i64: 1, 128>}]} {
    %c0 = arith.constant 0 : index
    %c0_0 = arith.constant 0 : index
    %0 = vector.load %arg3[%c0, %c0_0] : memref<64x16xf32, #tpu.memory_space<vmem>>, vector<64x16xf32>
    %c0_1 = arith.constant 0 : index
    %c0_2 = arith.constant 0 : index
    %1 = vector.load %arg1[%c0_1, %c0_2] : memref<128x16xf32, #tpu.memory_space<vmem>>, vector<128x16xf32>
    %cst = arith.constant dense<0.000000e+00> : vector<64x128xf32>
    %2 = tpu.matmul %0, %1, %cst {dimension_numbers = #tpu.dot_dimension_numbers<[1], [1], [0], [0], [0, 0, 1, 0], [], []>} : vector<64x16xf32>, vector<128x16xf32>, vector<64x128xf32> -> vector<64x128xf32>
    %c0_3 = arith.constant 0 : index
    %c0_4 = arith.constant 0 : index
    %3 = vector.load %arg4[%c0_3, %c0_4] : memref<64x8xf32, #tpu.memory_space<vmem>>, vector<64x8xf32>
    %c0_5 = arith.constant 0 : index
    %c0_6 = arith.constant 0 : index
    %4 = vector.load %arg2[%c0_5, %c0_6] : memref<128x8xf32, #tpu.memory_space<vmem>>, vector<128x8xf32>
    %cst_7 = arith.constant dense<0.000000e+00> : vector<64x128xf32>
    %5 = tpu.matmul %3, %4, %cst_7 {dimension_numbers = #tpu.dot_dimension_numbers<[1], [1], [0], [0], [0, 0, 1, 0], [], []>} : vector<64x8xf32>, vector<128x8xf32>, vector<64x128xf32> -> vector<64x128xf32>
    %6 = arith.addf %2, %5 : vector<64x128xf32>
    %c0_8 = arith.constant 0 : index
    %c0_9 = arith.constant 0 : index
    %c0_10 = arith.constant 0 : index
    %7 = vector.load %arg6[%c0_8, %c0_9, %c0_10] : memref<3x64x1xf32, #tpu.memory_space<vmem>>, vector<1x64x1xf32>
    %8 = vector.shape_cast %7 : vector<1x64x1xf32> to vector<64x1xf32>
    %9 = vector.broadcast %8 : vector<64x1xf32> to vector<64x128xf32>
    %10 = arith.addf %6, %9 : vector<64x128xf32>
    %cst_11 = arith.constant 0.000000e+00 : f32
    %11 = vector.broadcast %cst_11 : f32 to vector<64x128xf32>
    %12 = arith.maximumf %10, %11 : vector<64x128xf32>
    %c0_12 = arith.constant 0 : index
    %c0_13 = arith.constant 0 : index
    %c0_14 = arith.constant 0 : index
    %13 = vector.load %arg5[%c0_12, %c0_13, %c0_14] : memref<2x64x64xf32, #tpu.memory_space<vmem>>, vector<1x64x64xf32>
    %14 = vector.shape_cast %13 : vector<1x64x64xf32> to vector<64x64xf32>
    %cst_15 = arith.constant dense<0.000000e+00> : vector<64x128xf32>
    %15 = tpu.matmul %14, %12, %cst_15 {dimension_numbers = #tpu.dot_dimension_numbers<[1], [0], [0], [1], [0, 0, 1, 1], [], []>} : vector<64x64xf32>, vector<64x128xf32>, vector<64x128xf32> -> vector<64x128xf32>
    %c1 = arith.constant 1 : index
    %c0_16 = arith.constant 0 : index
    %c0_17 = arith.constant 0 : index
    %16 = vector.load %arg6[%c1, %c0_16, %c0_17] : memref<3x64x1xf32, #tpu.memory_space<vmem>>, vector<1x64x1xf32>
    %17 = vector.shape_cast %16 : vector<1x64x1xf32> to vector<64x1xf32>
    %18 = vector.broadcast %17 : vector<64x1xf32> to vector<64x128xf32>
    %19 = arith.addf %15, %18 : vector<64x128xf32>
    %cst_18 = arith.constant 0.000000e+00 : f32
    %20 = vector.broadcast %cst_18 : f32 to vector<64x128xf32>
    %21 = arith.maximumf %19, %20 : vector<64x128xf32>
    %c1_19 = arith.constant 1 : index
    %c0_20 = arith.constant 0 : index
    %c0_21 = arith.constant 0 : index
    %22 = vector.load %arg5[%c1_19, %c0_20, %c0_21] : memref<2x64x64xf32, #tpu.memory_space<vmem>>, vector<1x64x64xf32>
    %23 = vector.shape_cast %22 : vector<1x64x64xf32> to vector<64x64xf32>
    %cst_22 = arith.constant dense<0.000000e+00> : vector<64x128xf32>
    %24 = tpu.matmul %23, %21, %cst_22 {dimension_numbers = #tpu.dot_dimension_numbers<[1], [0], [0], [1], [0, 0, 1, 1], [], []>} : vector<64x64xf32>, vector<64x128xf32>, vector<64x128xf32> -> vector<64x128xf32>
    %c2 = arith.constant 2 : index
    %c0_23 = arith.constant 0 : index
    %c0_24 = arith.constant 0 : index
    %25 = vector.load %arg6[%c2, %c0_23, %c0_24] : memref<3x64x1xf32, #tpu.memory_space<vmem>>, vector<1x64x1xf32>
    %26 = vector.shape_cast %25 : vector<1x64x1xf32> to vector<64x1xf32>
    %27 = vector.broadcast %26 : vector<64x1xf32> to vector<64x128xf32>
    %28 = arith.addf %24, %27 : vector<64x128xf32>
    %29 = vector.extract_strided_slice %28 {offsets = [0, 0], sizes = [32, 128], strides = [1, 1]} : vector<64x128xf32> to vector<32x128xf32>
    %30 = vector.extract_strided_slice %28 {offsets = [32, 0], sizes = [32, 128], strides = [1, 1]} : vector<64x128xf32> to vector<32x128xf32>
    %31 = arith.mulf %29, %30 : vector<32x128xf32>
    %cst_25 = arith.constant dense<0.000000e+00> : vector<128xf32>
    %32 = vector.multi_reduction <add>, %31, %cst_25 [0] : vector<32x128xf32> to vector<128xf32>
    %33 = vector.shape_cast %32 : vector<128xf32> to vector<1x128xf32>
    %c0_26 = arith.constant 0 : index
    %c0_27 = arith.constant 0 : index
    %34 = memref.load %arg7[%c0_26, %c0_27] : memref<1x1xf32, #tpu.memory_space<smem>>
    %35 = vector.broadcast %34 : f32 to vector<1x128xf32>
    %36 = arith.addf %33, %35 : vector<1x128xf32>
    %c0_28 = arith.constant 0 : index
    %c0_29 = arith.constant 0 : index
    %37 = vector.load %arg8[%c0_28, %c0_29] : memref<1x128xf32, #tpu.memory_space<vmem>>, vector<1x128xf32>
    tpu.vector_store %arg8[%c0_28, %c0_29], %36 {strides = array<i32>} : memref<1x128xf32, #tpu.memory_space<vmem>>, vector<1x128xf32>,
    return
  }
  func.func @transform_0(%arg0: i32) -> (i32, i32) {
    %c0_i32 = arith.constant 0 : i32
    %c0_i32_0 = arith.constant 0 : i32
    return %arg0, %c0_i32 : i32, i32
  }
  func.func @transform_1(%arg0: i32) -> (i32, i32) {
    %c0_i32 = arith.constant 0 : i32
    %c0_i32_0 = arith.constant 0 : i32
    return %arg0, %c0_i32 : i32, i32
  }
  func.func @transform_2(%arg0: i32) -> (i32, i32) {
    %c0_i32 = arith.constant 0 : i32
    %c0_i32_0 = arith.constant 0 : i32
    %c0_i32_1 = arith.constant 0 : i32
    return %c0_i32, %c0_i32_0 : i32, i32
  }
  func.func @transform_3(%arg0: i32) -> (i32, i32) {
    %c0_i32 = arith.constant 0 : i32
    %c0_i32_0 = arith.constant 0 : i32
    %c0_i32_1 = arith.constant 0 : i32
    return %c0_i32, %c0_i32_0 : i32, i32
  }
  func.func @transform_4(%arg0: i32) -> (i32, i32, i32) {
    %c0_i32 = arith.constant 0 : i32
    %c0_i32_0 = arith.constant 0 : i32
    %c0_i32_1 = arith.constant 0 : i32
    %c0_i32_2 = arith.constant 0 : i32
    return %c0_i32, %c0_i32_0, %c0_i32_1 : i32, i32, i32
  }
  func.func @transform_5(%arg0: i32) -> (i32, i32, i32) {
    %c0_i32 = arith.constant 0 : i32
    %c0_i32_0 = arith.constant 0 : i32
    %c0_i32_1 = arith.constant 0 : i32
    %c0_i32_2 = arith.constant 0 : i32
    return %c0_i32, %c0_i32_0, %c0_i32_1 : i32, i32, i32
  }
  func.func @transform_6(%arg0: i32) -> (i32, i32) {
    %c0_i32 = arith.constant 0 : i32
    %c0_i32_0 = arith.constant 0 : i32
    %c0_i32_1 = arith.constant 0 : i32
    return %c0_i32, %c0_i32_0 : i32, i32
  }
  func.func @transform_7(%arg0: i32) -> (i32, i32) {
    %c0_i32 = arith.constant 0 : i32
    %c0_i32_0 = arith.constant 0 : i32
    return %c0_i32, %arg0 : i32, i32
  }
}

</mosaic_0001>

<bundles_post_ra>
// kernel: tpu_custom_call.1
= control target key start
LH: loop header
LB: loop body
LE: loop exit
PB: predicated region body
PF: predicated region fallthrough
CT: control target
= control target key end

     0   :  { %s2272_s0 = inlined_call_operand.vmem [shape: f32[256,16], index: 0, kind: input, shape index: {}]   ;;  %s2273_s1 = inlined_call_operand.vmem [shape: f32[256,8], index: 1, kind: input, shape index: {}]   ;;  %s2274_s2 = inlined_call_operand.vmem [shape: f32[64,16], index: 2, kind: input, shape index: {}]   ;;  %s2275_s3 = inlined_call_operand.vmem [shape: f32[64,8], index: 3, kind: input, shape index: {}]   ;;  %s2276_s4 = inlined_call_operand.vmem [shape: f32[2,64,64], index: 4, kind: input, shape index: {}]   ;;  %s2277_s5 = inlined_call_operand.vmem [shape: f32[3,64,1], index: 5, kind: input, shape index: {}]   ;;  %s2278_s6 = inlined_call_operand.<no memory space> [shape: f32[1,1], index: 6, kind: input, shape index: {}]   ;;  %s2279_s7 = inlined_call_operand.hbm [shape: f32[1,256], index: 7, kind: output, shape index: {}]  }
   0x1   :  { %12 = sst [smem:[#allocation2]] %s2278_s6 }
   0x2   :  { %13 = vsyncpa [#allocation4], 0 }
   0x3   :  { %15 = vsyncpa [#allocation4 + $0x1], 0  ;;  %s1858_s26 = smov 0   ;;  %s1860_s27 = smov 0  }
   0x4   :  { %s1862_s28 = smov 0   ;;  %s1864_s29 = smov 0  }
   0x5 LB: > { %s1247_s6 = sadd.s32 4294967295, %s1811_s29   ;;  %s1248_s30 = sadd.s32 4294967294, %s1811_s29   ;;  %s1811_s29 = sphi %s1864_s29, %s2289_s29   ;;  %s1807_s28 = sphi %s1862_s28, %s2288_s28   ;;  %s1803_s27 = sphi %s1860_s27, %s2287_s27   ;;  %s1799_s26 = sphi %s1858_s26, %s2286_s26  }
   0x6   : > { %s1881_s8 = sadd.s32 1, %s1811_s29   ;;  %s185_s9 = sadd.s32 1, %s1807_s28 }
   0x7   : > { %s182_s10 = ssub.s32 %s1811_s29, %s1881_s8  ;;  %p195_p0 = scmp.ne.s32.totalorder %s1807_s28, %s1803_s27 }
   0x8   : > { %p183_p1 = scmp.eq.s32.totalorder %s182_s10, 0  ;;  %p196_p2 = scmp.eq.s32.totalorder %s1247_s6, 1 }
   0x9   : > { %p201_p3 = scmp.ne.s32.totalorder %s1803_s27, %s1799_s26  ;;  %p202_p4 = scmp.eq.s32.totalorder %s1248_s30, 1 }
   0xa   : > { %s1891_s11 = scalar_select %p183_p1, %s1807_s28, %s185_s9  }
   0xb   : > { %p1893_p5 = por %p196_p2, %p195_p0  ;;  %p1897_p6 = por %p202_p4, %p201_p3 }
   0xc   : > { %p1251_p7 = scmp.ge.s32.totalorder %s1811_s29, 1  ;;  %p253_p8 = scmp.lt.s32.totalorder %s1811_s29, 3 }
   0xe   : > { %p254_p9 = pnand %p1251_p7, %p253_p8 }
   0xf   : > { %s1903_s14 = sshll.u32 (!%p254_p9), %s1247_s6, 4  ;;  %vm349_vm0 = vcmask (!%p254_p9), 64512   ;;  %vm527_vm1 = vcmask (!%p254_p9), 130048   ;;  %v325_v0 = vld [vmem:[%s2275_s3] sm:$0xff] (!%p254_p9)  ;;  %v1813_v2 = vmov (!%p254_p9), 0   ;;  %v707_v6 = vld [vmem:[%s2277_s5 + $0x10] sm:$0xff] (!%p254_p9) }
  0x10   : > { %257 = sbr.rel (%p254_p9) target bundleno = 828 (0x33c), region = 48  ;;  %v301_v1 = vld [vmem:[%s2274_s2] sm:$0xff] (!%p254_p9)  ;;  %p290_p10 = scmp.lt.s32.totalorder (!%p254_p9), %s1903_s14, 31  ;;  %1459 = vmatprep.mubr.msk.f32.mxu1 (!%p254_p9), %vm349_vm0, %v325_v0  ;;  %1747 = vset.pattern.permute.xlu0 (!%p254_p9), %v1813_v2  ;;  %vm1917_vm2 = vmpackc.low (!%p254_p9), %vm349_vm0, %vm349_vm0  ;;  %v706_v19 = vld [vmem:[%s2277_s5 + $0x8] sm:$0xff] (!%p254_p9)  ;;  %vm826_vm4 = vcmask (!%p254_p9), 523264  }
  0x11   : > { %1503 = vmatprep.mubr.msk.f32.mxu0 (!%p254_p9), %vm527_vm1, %v301_v1  ;;  %1748 = vset.pattern.permute.xlu1 (!%p254_p9), %v1813_v2  ;;  %vm1933_vm3 = vmpackc.low (!%p254_p9), %vm527_vm1, %vm527_vm1  ;;  %v705_v5 = vld [vmem:[%s2277_s5] sm:$0xff] (!%p254_p9)  ;;  %v708_v26 = vld [vmem:[%s2277_s5 + $0x18] sm:$0xff] (!%p254_p9)  ;;  %s2230_s30 = scalar_lea.hbm (!%p254_p9), %s2279_s7, %s1903_s14  ;;  %s1814_s15 = smov (!%p254_p9), [#allocation3]  }
  0x12   : > { %715 = vperm.xlu0 (!%p254_p9), %1747, %v705_v5   ;;  %725 = vperm.xlu1 (!%p254_p9), %1748, %v707_v6   ;;  %v709_v27 = vld [vmem:[%s2277_s5 + $0x20] sm:$0xff] (!%p254_p9)  ;;  %v710_v28 = vld [vmem:[%s2277_s5 + $0x28] sm:$0xff] (!%p254_p9)  ;;  %v711_v29 = vld [vmem:[%s2277_s5 + $0x30] sm:$0xff] (!%p254_p9)  ;;  %s1753_s16 = sshll.u32 (!%p254_p9), %s1814_s15, 4  ;;  %s1754_s16 = int_to_ptr.vmem [resolvable:$false] %s1753_s16 }
  0x13   : > { %v712_v34 = vld [vmem:[%s2277_s5 + $0x38] sm:$0xff] (!%p254_p9)  ;;  %v1304_v36 = vld [vmem:[%s2277_s5 + $0x40] sm:$0xff] (!%p254_p9)  ;;  %v1305_v38 = vld [vmem:[%s2277_s5 + $0x48] sm:$0xff] (!%p254_p9)  ;;  %s1755_s17 = scalar_lea.vmem (!%p254_p9), %s1754_s16, 32 }
  0x14   : > { %v1306_v39 = vld [vmem:[%s2277_s5 + $0x50] sm:$0xff] (!%p254_p9)  ;;  %v1307_v44 = vld [vmem:[%s2277_s5 + $0x58] sm:$0xff] (!%p254_p9)  ;;  %v1308_v46 = vld [vmem:[%s2277_s5 + $0x60] sm:$0xff] (!%p254_p9) }
  0x15   : > { %v1309_v48 = vld [vmem:[%s2277_s5 + $0x68] sm:$0xff] (!%p254_p9)  ;;  %v1310_v49 = vld [vmem:[%s2277_s5 + $0x70] sm:$0xff] (!%p254_p9)  ;;  %v1311_v54 = vld [vmem:[%s2277_s5 + $0x78] sm:$0xff] (!%p254_p9) }
  0x16   : > { %720 = vperm.xlu0 (!%p254_p9), %1747, %v706_v19   ;;  %730 = vperm.xlu1 (!%p254_p9), %1748, %v708_v26   ;;  %v1328_v56 = vld [vmem:[%s2277_s5 + $0x80] sm:$0xff] (!%p254_p9)  ;;  %v1329_v58 = vld [vmem:[%s2277_s5 + $0x88] sm:$0xff] (!%p254_p9)  ;;  %v1330_v2 = vld [vmem:[%s2277_s5 + $0x90] sm:$0xff] (!%p254_p9) }
  0x17   : > { %s291_s19 = scalar_select %p290_p10, %s1903_s14, 31  ;;  %v1332_v59 = vld [vmem:[%s2277_s5 + $0xa0] sm:$0xff]  ;;  %v1333_v0 = vld [vmem:[%s2277_s5 + $0xa8] sm:$0xff]  ;;  %v1334_v6 = vld [vmem:[%s2277_s5 + $0xb0] sm:$0xff] }
  0x18   : > { %v303_v3 = vld [vmem:[%s2274_s2 + $0x10] sm:$0xff]  ;;  %v328_v4 = vld [vmem:[%s2275_s3 + $0x18] sm:$0xff]  ;;  %v329_v19 = vld [vmem:[%s2275_s3 + $0x20] sm:$0xff] }
  0x19   : > { %s1253_s20 = sshll.u32 %s291_s19, 3  ;;  %v308_v26 = vld [vmem:[%s2274_s2 + $0x38] sm:$0xff] }
  0x1a   : > { %s1924_s23 = scalar_lea.vmem %s2273_s1, %s1253_s20  ;;  %s1929_s6 = scalar_lea.vmem %s2272_s0, %s1253_s20  ;;  %735 = vperm.xlu0 %1747, %v709_v27   ;;  %740 = vperm.xlu1 %1748, %v710_v28   ;;  %v769_v27 = vld [vmem:[%s2276_s4] sm:$0xff] }
  0x1b   : > { %v333_v7 = vld [vmem:[%s1924_s23] sm:$0xff]  ;;  %v334_v8 = vld [vmem:[%s1924_s23 + $0x8] sm:$0xff]  ;;  %v335_v12 = vld [vmem:[%s1924_s23 + $0x10] sm:$0xff] }
  0x1c   : > { %v309_v9 = vld [vmem:[%s1929_s6] sm:$0xff]  ;;  %v1571_v10 = vpack.c.bf16 %v334_v8, %v333_v7  ;;  %v310_v11 = vld [vmem:[%s1929_s6 + $0x8] sm:$0xff]  ;;  %v336_v13 = vld [vmem:[%s1924_s23 + $0x18] sm:$0xff] }
  0x1d   : > { %v1619_v14 = vpack.c.bf16 %v310_v11, %v309_v9  ;;  %v1577_v15 = vpack.c.bf16 %v336_v13, %v335_v12  ;;  %v311_v16 = vld [vmem:[%s1929_s6 + $0x10] sm:$0xff]  ;;  %v312_v17 = vld [vmem:[%s1929_s6 + $0x18] sm:$0xff]  ;;  %v337_v20 = vld [vmem:[%s1924_s23 + $0x20] sm:$0xff] }
  0x1e   : > { %1573 = vmatprep.subr.msk.bf16.mxu1 %vm1917_vm2, %v1571_v10  ;;  %v1625_v18 = vpack.c.bf16 %v312_v17, %v311_v16  ;;  %v338_v21 = vld [vmem:[%s1924_s23 + $0x28] sm:$0xff]  ;;  %v313_v22 = vld [vmem:[%s1929_s6 + $0x20] sm:$0xff]  ;;  %v339_v30 = vld [vmem:[%s1924_s23 + $0x30] sm:$0xff]  ;;  %745 = vperm.xlu0 %1747, %v711_v29  }
  0x1f   : > { %1621 = vmatprep.subr.msk.bf16.mxu0 %vm1933_vm3, %v1619_v14  ;;  %1576 = vmatpush3.bf16.xpose.msk.msra.mxu1 %vm1917_vm2, %v1571_v10  ;;  %v314_v23 = vld [vmem:[%s1929_s6 + $0x28] sm:$0xff]  ;;  %v1583_v24 = vpack.c.bf16 %v338_v21, %v337_v20  ;;  %v340_v31 = vld [vmem:[%s1924_s23 + $0x38] sm:$0xff]  ;;  %v315_v32 = vld [vmem:[%s1929_s6 + $0x30] sm:$0xff] }
  0x20   : > { %1624 = vmatpush3.bf16.xpose.msk.msra.mxu0 %vm1933_vm3, %v1619_v14  ;;  %1579 = vmatprep.subr.msk.bf16.mxu1 %vm1917_vm2, %v1577_v15  ;;  %v1631_v25 = vpack.c.bf16 %v314_v23, %v313_v22  ;;  %v316_v33 = vld [vmem:[%s1929_s6 + $0x38] sm:$0xff]  ;;  %v1589_v35 = vpack.c.bf16 %v340_v31, %v339_v30  ;;  %v341_v40 = vld [vmem:[%s1924_s23 + $0x40] sm:$0xff]  ;;  %v342_v41 = vld [vmem:[%s1924_s23 + $0x48] sm:$0xff] }
  0x21   : > { %1627 = vmatprep.subr.msk.bf16.mxu0 %vm1933_vm3, %v1625_v18  ;;  %v1637_v37 = vpack.c.bf16 %v316_v33, %v315_v32  ;;  %750 = vperm.xlu1 %1748, %v712_v34   ;;  %v317_v42 = vld [vmem:[%s1929_s6 + $0x40] sm:$0xff]  ;;  %v318_v43 = vld [vmem:[%s1929_s6 + $0x48] sm:$0xff]  ;;  %v1595_v45 = vpack.c.bf16 %v342_v41, %v341_v40  ;;  %v343_v50 = vld [vmem:[%s1924_s23 + $0x50] sm:$0xff] }
  0x22   : > { %788 = vperm.xlu0 %1747, %v1304_v36   ;;  %v1643_v47 = vpack.c.bf16 %v318_v43, %v317_v42  ;;  %v344_v51 = vld [vmem:[%s1924_s23 + $0x58] sm:$0xff]  ;;  %v319_v52 = vld [vmem:[%s1929_s6 + $0x50] sm:$0xff]  ;;  %v345_v60 = vld [vmem:[%s1924_s23 + $0x60] sm:$0xff] }
  0x23   : > { %v320_v53 = vld [vmem:[%s1929_s6 + $0x58] sm:$0xff]  ;;  %v1601_v55 = vpack.c.bf16 %v344_v51, %v343_v50  ;;  %v346_v61 = vld [vmem:[%s1924_s23 + $0x68] sm:$0xff]  ;;  %v321_v62 = vld [vmem:[%s1929_s6 + $0x60] sm:$0xff] }
  0x24   : > { %v1649_v57 = vpack.c.bf16 %v320_v53, %v319_v52  ;;  %v322_v63 = vld [vmem:[%s1929_s6 + $0x68] sm:$0xff]  ;;  %v1607_v1 = vpack.c.bf16 %v346_v61, %v345_v60  ;;  %v1331_v7 = vld [vmem:[%s2277_s5 + $0x98] sm:$0xff]  ;;  %v347_v8 = vld [vmem:[%s1924_s23 + $0x70] sm:$0xff] }
  0x25   : > { %793 = vperm.xlu1 %1748, %v1305_v38   ;;  %v1655_v5 = vpack.c.bf16 %v322_v63, %v321_v62  ;;  %v348_v9 = vld [vmem:[%s1924_s23 + $0x78] sm:$0xff]  ;;  %v323_v10 = vld [vmem:[%s1929_s6 + $0x70] sm:$0xff]  ;;  %v302_v16 = vld [vmem:[%s2274_s2 + $0x8] sm:$0xff]  ;;  %s1164_s23 = sld [smem:[#allocation2]] }
  0x26   : > { %798 = vperm.xlu0 %1747, %v1306_v39   ;;  %v324_v11 = vld [vmem:[%s1929_s6 + $0x78] sm:$0xff]  ;;  %v1613_v13 = vpack.c.bf16 %v348_v9, %v347_v8  ;;  %v327_v17 = vld [vmem:[%s2275_s3 + $0x10] sm:$0xff]  ;;  %v305_v20 = vld [vmem:[%s2274_s2 + $0x20] sm:$0xff]  ;;  %s287_s6 = sand.u32 1, %s1803_s27  }
  0x27   : > { %1582 = vmatpush3.bf16.xpose.msk.msra.mxu1 %vm1917_vm2, %v1577_v15  ;;  %v1335_v12 = vld [vmem:[%s2277_s5 + $0xb8] sm:$0xff]  ;;  %v1661_v14 = vpack.c.bf16 %v324_v11, %v323_v10  ;;  %v326_v15 = vld [vmem:[%s2275_s3 + $0x8] sm:$0xff]  ;;  %v331_v23 = vld [vmem:[%s2275_s3 + $0x30] sm:$0xff]  ;;  %s288_s21 = scalar_lea.vmem [#allocation3], %s287_s6  ;;  %s1169_s9 = scalar_lea.sflag [#allocation4], %s287_s6 }
  0x28   : > { %1630 = vmatpush3.bf16.xpose.msk.msra.mxu0 %vm1933_vm3, %v1625_v18  ;;  %1585 = vmatprep.subr.msk.bf16.mxu1 %vm1917_vm2, %v1583_v24  ;;  %v304_v18 = vld [vmem:[%s2274_s2 + $0x18] sm:$0xff]  ;;  %v330_v21 = vld [vmem:[%s2275_s3 + $0x28] sm:$0xff]  ;;  %s1181_s22 = sshll.u32 %s288_s21, 4  ;;  %s2232_s22 = int_to_ptr.vmem [resolvable:$true] %s1181_s22 }
  0x29   : > { %1633 = vmatprep.subr.msk.bf16.mxu0 %vm1933_vm3, %v1631_v25  ;;  %803 = vperm.xlu1 %1748, %v1307_v44   ;;  %v306_v22 = vld [vmem:[%s2274_s2 + $0x28] sm:$0xff]  ;;  %s1749_s10 = scalar_lea.vmem %s2232_s22, 16  ;;  %p1756_p0 = scmp.lt.s32.totalorder %s2232_s22, %s1754_s16 }
  0x2a   : > { %808 = vperm.xlu0 %1747, %v1308_v46   ;;  %p1750_p11 = scmp.ne.s32.totalorder %s2232_s22, %s1749_s10  ;;  %p1757_p1 = scmp.lt.s32.totalorder %s1755_s17, %s1749_s10 }
  0x2c   : > { %p1751_p12 = pnand %p1750_p11, %p1893_p5  ;;  %p1758_p2 = por %p1757_p1, %p1756_p0 }
  0x2d   : > { %813 = vperm.xlu1 %1748, %v1309_v48  }
  0x2e   : > { %818 = vperm.xlu0 %1747, %v1310_v49   ;;  %p1752_p13 = pneg %p1751_p12 }
  0x2f   : > { %1588 = vmatpush3.bf16.xpose.msk.msra.mxu1 %vm1917_vm2, %v1583_v24  ;;  %v307_v24 = vld [vmem:[%s2274_s2 + $0x30] sm:$0xff] }
  0x30   : > { %1636 = vmatpush3.bf16.xpose.msk.msra.mxu0 %vm1933_vm3, %v1631_v25  ;;  %1591 = vmatprep.subr.msk.bf16.mxu1 %vm1917_vm2, %v1589_v35  ;;  %v332_v25 = vld [vmem:[%s2275_s3 + $0x38] sm:$0xff]  ;;  %p1759_p3 = pnand %p1758_p2, %p1752_p13 }
  0x31   : > { %1639 = vmatprep.subr.msk.bf16.mxu0 %vm1933_vm3, %v1637_v37  ;;  %823 = vperm.xlu1 %1748, %v1311_v54  }
  0x32   : > { %984 = vperm.xlu0 %1747, %v1328_v56  }
  0x35   : > { %989 = vperm.xlu1 %1748, %v1329_v58  }
  0x36   : > { %1004 = vperm.xlu0 %1747, %v1332_v59  }
  0x37   : > { %1594 = vmatpush3.bf16.xpose.msk.msra.mxu1 %vm1917_vm2, %v1589_v35 }
  0x38   : > { %1642 = vmatpush3.bf16.xpose.msk.msra.mxu0 %vm1933_vm3, %v1637_v37  ;;  %1597 = vmatprep.subr.msk.bf16.mxu1 %vm1917_vm2, %v1595_v45 }
  0x39   : > { %1645 = vmatprep.subr.msk.bf16.mxu0 %vm1933_vm3, %v1643_v47  ;;  %1009 = vperm.xlu1 %1748, %v1333_v0  }
  0x3a   : > { %994 = vperm.xlu0 %1747, %v1330_v2  }
  0x3d   : > { %1014 = vperm.xlu1 %1748, %v1334_v6  }
  0x3e   : > { %999 = vperm.xlu0 %1747, %v1331_v7  }
  0x3f   : > { %1600 = vmatpush3.bf16.xpose.msk.msra.mxu1 %vm1917_vm2, %v1595_v45 }
  0x40   : > { %1648 = vmatpush3.bf16.xpose.msk.msra.mxu0 %vm1933_vm3, %v1643_v47  ;;  %1603 = vmatprep.subr.msk.bf16.mxu1 %vm1917_vm2, %v1601_v55 }
  0x41   : > { %1651 = vmatprep.subr.msk.bf16.mxu0 %vm1933_vm3, %v1649_v57  ;;  %1019 = vperm.xlu1 %1748, %v1335_v12  }
  0x47   : > { %1606 = vmatpush3.bf16.xpose.msk.msra.mxu1 %vm1917_vm2, %v1601_v55 }
  0x48   : > { %1654 = vmatpush3.bf16.xpose.msk.msra.mxu0 %vm1933_vm3, %v1649_v57  ;;  %1609 = vmatprep.subr.msk.bf16.mxu1 %vm1917_vm2, %v1607_v1 }
  0x49   : > { %1657 = vmatprep.subr.msk.bf16.mxu0 %vm1933_vm3, %v1655_v5 }
  0x4f   : > { %1612 = vmatpush3.bf16.xpose.msk.msra.mxu1 %vm1917_vm2, %v1607_v1 }
  0x50   : > { %1660 = vmatpush3.bf16.xpose.msk.msra.mxu0 %vm1933_vm3, %v1655_v5  ;;  %1615 = vmatprep.subr.msk.bf16.mxu1 %vm1917_vm2, %v1613_v13 }
  0x51   : > { %1663 = vmatprep.subr.msk.bf16.mxu0 %vm1933_vm3, %v1661_v14 }
  0x57   : > { %1618 = vmatpush3.bf16.xpose.msk.msra.mxu1 %vm1917_vm2, %v1613_v13 }
  0x58   : > { %1666 = vmatpush3.bf16.xpose.msk.msra.mxu0 %vm1933_vm3, %v1661_v14 }
  0x5e   : > { %1460 = vmatmul.mubr.msk.f32.vlgmr.msra.gmra.mrb[0].mxu1 %vm349_vm0, %v326_v15 }
  0x5f   : > { %1504 = vmatmul.mubr.msk.f32.vlgmr.msra.gmra.mrb[0].mxu0 %vm527_vm1, %v302_v16  ;;  %1462 = vmatprep.mubr.msk.f32.mxu1 %vm349_vm0, %v327_v17 }
  0x60   : > { %1506 = vmatprep.mubr.msk.f32.mxu0 %vm527_vm1, %v303_v3  ;;  %v770_v3 = vld [vmem:[%s2276_s4 + $0x8] sm:$0xff] }
  0x62   : > { %1463 = vmatmul.mubr.msk.f32.gmra.mrb[2].mxu1 %vm349_vm0, %v328_v4  ;;  %v771_v4 = vld [vmem:[%s2276_s4 + $0x10] sm:$0xff] }
  0x63   : > { %1507 = vmatmul.mubr.msk.f32.gmra.mrb[2].mxu0 %vm527_vm1, %v304_v18  ;;  %1465 = vmatprep.mubr.msk.f32.mxu1 %vm349_vm0, %v329_v19  ;;  %v772_v18 = vld [vmem:[%s2276_s4 + $0x18] sm:$0xff]  ;;  %v773_v19 = vld [vmem:[%s2276_s4 + $0x20] sm:$0xff] }
  0x64   : > { %1509 = vmatprep.mubr.msk.f32.mxu0 %vm527_vm1, %v305_v20  ;;  %v774_v20 = vld [vmem:[%s2276_s4 + $0x28] sm:$0xff] }
  0x66   : > { %1466 = vmatmul.mubr.msk.f32.gmra.mrb[4].mxu1 %vm349_vm0, %v330_v21  ;;  %v775_v21 = vld [vmem:[%s2276_s4 + $0x30] sm:$0xff] }
  0x67   : > { %1510 = vmatmul.mubr.msk.f32.gmra.mrb[4].mxu0 %vm527_vm1, %v306_v22  ;;  %1468 = vmatprep.mubr.msk.f32.mxu1 %vm349_vm0, %v331_v23  ;;  %v776_v22 = vld [vmem:[%s2276_s4 + $0x38] sm:$0xff]  ;;  %v1320_v23 = vld [vmem:[%s2276_s4 + $0x40] sm:$0xff] }
  0x68   : > { %1512 = vmatprep.mubr.msk.f32.mxu0 %vm527_vm1, %v307_v24 }
  0x6a   : > { %1469 = vmatmul.mubr.msk.f32.gmra.mrb[6].mxu1 %vm349_vm0, %v332_v25 }
  0x6b   : > { %1513 = vmatmul.mubr.msk.f32.gmra.mrb[6].mxu0 %vm527_vm1, %v308_v26  ;;  %1559 = vmatprep.mubr.msk.f32.mxu1 %vm826_vm4, %v1320_v23 }
  0x6c   : > { %1531 = vmatprep.mubr.msk.f32.mxu0 %vm826_vm4, %v769_v27 }
  0x91   : > { %v726_v28 = vpop.permute.xlu1 %725  ;;  %v716_v29 = vpop.permute.xlu0 %715 }
  0x95   : > { %v731_v33 = vpop.permute.xlu1 %730  ;;  %v721_v36 = vpop.permute.xlu0 %720 }
  0x99   : > { %v741_v48 = vpop.permute.xlu1 %740  ;;  %v736_v55 = vpop.permute.xlu0 %735 }
  0x9d   : > { %v746_v11 = vpop.permute.xlu0 %745 }
  0xa0   : > { %v751_v8 = vpop.permute.xlu1 %750 }
  0xa1   : > { %v789_v25 = vpop.permute.xlu0 %788 }
  0xa4   : > { %v794_v24 = vpop.permute.xlu1 %793 }
  0xa8   : > { %v804_v26 = vpop.permute.xlu1 %803 }
 0x131   : > { %v1461_v30 = vpop.f32.mrb[0].mxu1 }
 0x132   : > { %v1505_v31 = vpop.f32.mrb[0].mxu0  ;;  %v488_v32 = vpop.f32.mrb[1].mxu1 }
 0x133   : > { %v672_v34 = vadd.f32 %v1505_v31, %v1461_v30  ;;  %v666_v35 = vpop.f32.mrb[1].mxu0 }
 0x134   : > { %v667_v37 = vadd.f32 %v666_v35, %v488_v32 }
 0x135   : > { %v754_v38 = vadd.f32 %v721_v36, %v672_v34  ;;  %v1464_v39 = vpop.f32.mrb[2].mxu1 }
 0x136   : > { %v753_v40 = vadd.f32 %v716_v29, %v667_v37  ;;  %v1508_v41 = vpop.f32.mrb[2].mxu0  ;;  %v498_v42 = vpop.f32.mrb[3].mxu1 }
 0x137   : > { %v762_v43 = vmax.f32 %v754_v38, 0.0  ;;  %v682_v44 = vadd.f32 %v1508_v41, %v1464_v39  ;;  %v676_v45 = vpop.f32.mrb[3].mxu0  ;;  %v814_v37 = vpop.permute.xlu1 %813 }
 0x138   : > { %v761_v46 = vmax.f32 %v753_v40, 0.0  ;;  %v677_v47 = vadd.f32 %v676_v45, %v498_v42 }
 0x139   : > { %v756_v49 = vadd.f32 %v731_v33, %v682_v44  ;;  %v1467_v50 = vpop.f32.mrb[4].mxu1 }
 0x13a   : > { %v755_v51 = vadd.f32 %v726_v28, %v677_v47  ;;  %v1511_v52 = vpop.f32.mrb[4].mxu0  ;;  %v508_v53 = vpop.f32.mrb[5].mxu1  ;;  %v1667_v54 = vpack.c.bf16 %v762_v43, %v761_v46 }
 0x13b   : > { %v764_v56 = vmax.f32 %v756_v49, 0.0  ;;  %v692_v57 = vadd.f32 %v1511_v52, %v1467_v50  ;;  %v686_v58 = vpop.f32.mrb[5].mxu0  ;;  %v799_v28 = vpop.permute.xlu0 %798 }
 0x13c   : > { %v763_v59 = vmax.f32 %v755_v51, 0.0  ;;  %v687_v60 = vadd.f32 %v686_v58, %v508_v53  ;;  %1668 = vmatprep.subr.bf16.mxu0 %v1667_v54  ;;  %v824_v49 = vpop.permute.xlu1 %823 }
 0x13d   : > { %v758_v61 = vadd.f32 %v741_v48, %v692_v57  ;;  %1670 = vmatpush3.bf16.msra.mxu0 %v1667_v54  ;;  %v1470_v62 = vpop.f32.mrb[6].mxu1 }
 0x13e   : > { %v757_v63 = vadd.f32 %v736_v55, %v687_v60  ;;  %v1514_v0 = vpop.f32.mrb[6].mxu0  ;;  %v518_v1 = vpop.f32.mrb[7].mxu1  ;;  %v1671_v2 = vpack.c.bf16 %v764_v56, %v763_v59  ;;  %v1321_v60 = vld [vmem:[%s2276_s4 + $0x48] sm:$0xff] }
 0x13f   : > { %v766_v5 = vmax.f32 %v758_v61, 0.0  ;;  %v702_v6 = vadd.f32 %v1514_v0, %v1470_v62  ;;  %v696_v7 = vpop.f32.mrb[7].mxu0  ;;  %v809_v40 = vpop.permute.xlu0 %808  ;;  %v1322_v61 = vld [vmem:[%s2276_s4 + $0x50] sm:$0xff]  ;;  %v1323_v62 = vld [vmem:[%s2276_s4 + $0x58] sm:$0xff]  ;;  %v1325_v0 = vld [vmem:[%s2276_s4 + $0x68] sm:$0xff] }
 0x140   : > { %v765_v9 = vmax.f32 %v757_v63, 0.0  ;;  %v697_v10 = vadd.f32 %v696_v7, %v518_v1  ;;  %1672 = vmatprep.subr.bf16.mxu0 %v1671_v2  ;;  %v1324_v63 = vld [vmem:[%s2276_s4 + $0x60] sm:$0xff]  ;;  %v1326_v1 = vld [vmem:[%s2276_s4 + $0x70] sm:$0xff] }
 0x141   : > { %v760_v12 = vadd.f32 %v751_v8, %v702_v6  ;;  %1674 = vmatpush3.bf16.msra.mxu0 %v1671_v2  ;;  %v1327_v2 = vld [vmem:[%s2276_s4 + $0x78] sm:$0xff]  ;;  %v990_v6 = vpop.permute.xlu1 %989 }
 0x142   : > { %v759_v13 = vadd.f32 %v746_v11, %v697_v10  ;;  %v1675_v14 = vpack.c.bf16 %v766_v5, %v765_v9 }
 0x143   : > { %v768_v15 = vmax.f32 %v760_v12, 0.0  ;;  %v819_v52 = vpop.permute.xlu0 %818 }
 0x144   : > { %v767_v16 = vmax.f32 %v759_v13, 0.0  ;;  %1676 = vmatprep.subr.bf16.mxu0 %v1675_v14 }
 0x145   : > { %1678 = vmatpush3.bf16.msra.mxu0 %v1675_v14  ;;  %v1010_v8 = vpop.permute.xlu1 %1009 }
 0x146   : > { %v1679_v17 = vpack.c.bf16 %v768_v15, %v767_v16 }
 0x147   : > { %v985_v5 = vpop.permute.xlu0 %984 }
 0x148   : > { %1680 = vmatprep.subr.bf16.mxu0 %v1679_v17 }
 0x149   : > { %1682 = vmatpush3.bf16.msra.mxu0 %v1679_v17  ;;  %v1015_v14 = vpop.permute.xlu1 %1014 }
 0x14b   : > { %v1005_v7 = vpop.permute.xlu0 %1004 }
 0x14c   : > { %1532 = vmatmul.mubr.msk.f32.vlgmr.msra.gmra.mrb[8].mxu0 %vm826_vm4, %v770_v3 }
 0x14d   : > { %1534 = vmatprep.mubr.msk.f32.mxu0 %vm826_vm4, %v771_v4 }
 0x14f   : > { %v995_v12 = vpop.permute.xlu0 %994 }
 0x150   : > { %1535 = vmatmul.mubr.msk.f32.gmra.mrb[10].mxu0 %vm826_vm4, %v772_v18 }
 0x151   : > { %1537 = vmatprep.mubr.msk.f32.mxu0 %vm826_vm4, %v773_v19 }
 0x153   : > { %v1000_v19 = vpop.permute.xlu0 %999 }
 0x154   : > { %1538 = vmatmul.mubr.msk.f32.gmra.mrb[12].mxu0 %vm826_vm4, %v774_v20 }
 0x155   : > { %1540 = vmatprep.mubr.msk.f32.mxu0 %vm826_vm4, %v775_v21  ;;  %v1020_v21 = vpop.permute.xlu1 %1019 }
 0x158   : > { %1541 = vmatmul.mubr.msk.f32.gmra.mrb[14].mxu0 %vm826_vm4, %v776_v22 }
 0x21f   : > { %v1533_v27 = vpop.f32.mrb[8].mxu0 }
 0x220   : > { %v923_v29 = vadd.f32 %v1533_v27, %v794_v24  ;;  %v917_v30 = vpop.f32.mrb[9].mxu0 }
 0x221   : > { %v918_v31 = vadd.f32 %v917_v30, %v789_v25 }
 0x222   : > { %v957_v32 = vmax.f32 %v923_v29, 0.0 }
 0x223   : > { %v956_v33 = vmax.f32 %v918_v31, 0.0  ;;  %v1536_v34 = vpop.f32.mrb[10].mxu0 }
 0x224   : > { %v933_v35 = vadd.f32 %v1536_v34, %v804_v26  ;;  %v927_v36 = vpop.f32.mrb[11].mxu0 }
 0x225   : > { %v1683_v38 = vpack.c.bf16 %v957_v32, %v956_v33  ;;  %v928_v39 = vadd.f32 %v927_v36, %v799_v28 }
 0x226   : > { %v959_v41 = vmax.f32 %v933_v35, 0.0 }
 0x227   : > { %v958_v42 = vmax.f32 %v928_v39, 0.0  ;;  %v1539_v43 = vpop.f32.mrb[12].mxu0  ;;  %1684 = vmatprep.subr.bf16.mxu1 %v1683_v38  ;;  %v1165_v39 = vstv %s1164_s23 }
 0x228   : > { %v943_v44 = vadd.f32 %v1539_v43, %v814_v37  ;;  %v937_v45 = vpop.f32.mrb[13].mxu0  ;;  %1686 = vmatpush3.bf16.msra.mxu1 %v1683_v38 }
 0x229   : > { %v1687_v46 = vpack.c.bf16 %v959_v41, %v958_v42  ;;  %v938_v47 = vadd.f32 %v937_v45, %v809_v40 }
 0x22a   : > { %v961_v48 = vmax.f32 %v943_v44, 0.0 }
 0x22b   : > { %v960_v50 = vmax.f32 %v938_v47, 0.0  ;;  %v1542_v51 = vpop.f32.mrb[14].mxu0  ;;  %1688 = vmatprep.subr.bf16.mxu1 %v1687_v46 }
 0x22c   : > { %v953_v53 = vadd.f32 %v1542_v51, %v824_v49  ;;  %v947_v54 = vpop.f32.mrb[15].mxu0  ;;  %1690 = vmatpush3.bf16.msra.mxu1 %v1687_v46 }
 0x22d   : > { %v1691_v55 = vpack.c.bf16 %v961_v48, %v960_v50  ;;  %v948_v56 = vadd.f32 %v947_v54, %v819_v52 }
 0x22e   : > { %v963_v57 = vmax.f32 %v953_v53, 0.0 }
 0x22f   : > { %v962_v58 = vmax.f32 %v948_v56, 0.0  ;;  %1692 = vmatprep.subr.bf16.mxu1 %v1691_v55 }
 0x230   : > { %1694 = vmatpush3.bf16.msra.mxu1 %v1691_v55 }
 0x231   : > { %v1695_v59 = vpack.c.bf16 %v963_v57, %v962_v58 }
 0x233   : > { %1696 = vmatprep.subr.bf16.mxu1 %v1695_v59 }
 0x234   : > { %1698 = vmatpush3.bf16.msra.mxu1 %v1695_v59 }
 0x237   : > { %1560 = vmatmul.mubr.msk.f32.vlgmr.msra.gmra.mrb[8].mxu1 %vm826_vm4, %v1321_v60 }
 0x238   : > { %1562 = vmatprep.mubr.msk.f32.mxu1 %vm826_vm4, %v1322_v61 }
 0x23b   : > { %1563 = vmatmul.mubr.msk.f32.gmra.mrb[10].mxu1 %vm826_vm4, %v1323_v62 }
 0x23c   : > { %1565 = vmatprep.mubr.msk.f32.mxu1 %vm826_vm4, %v1324_v63 }
 0x23f   : > { %1566 = vmatmul.mubr.msk.f32.gmra.mrb[12].mxu1 %vm826_vm4, %v1325_v0 }
 0x240   : > { %1568 = vmatprep.mubr.msk.f32.mxu1 %vm826_vm4, %v1326_v1 }
 0x243   : > { %1569 = vmatmul.mubr.msk.f32.gmra.mrb[14].mxu1 %vm826_vm4, %v1327_v2 }
 0x30a   : > { %v1561_v9 = vpop.f32.mrb[8].mxu1 }
 0x30b   : > { %v1112_v10 = vpop.f32.mrb[9].mxu1  ;;  %v1118_v16 = vadd.f32 %v1561_v9, %v990_v6 }
 0x30c   : > { %v1113_v4 = vadd.f32 %v1112_v10, %v985_v5 }
 0x30e   : > { %v1564_v11 = vpop.f32.mrb[10].mxu1 }
 0x30f   : > { %v1122_v13 = vpop.f32.mrb[11].mxu1  ;;  %v1128_v24 = vadd.f32 %v1564_v11, %v1000_v19 }
 0x310   : > { %v1123_v27 = vadd.f32 %v1122_v13, %v995_v12 }
 0x312   : > { %v1567_v15 = vpop.f32.mrb[12].mxu1 }
 0x313   : > { %v1138_v17 = vadd.f32 %v1567_v15, %v1010_v8  ;;  %v1132_v3 = vpop.f32.mrb[13].mxu1 }
 0x314   : > { %v1133_v18 = vadd.f32 %v1132_v3, %v1005_v7 }
 0x315   : > { %v1152_v20 = vmul.f32 %v1138_v17, %v1118_v16 }
 0x316   : > { %v1151_v22 = vmul.f32 %v1133_v18, %v1113_v4  ;;  %v1570_v23 = vpop.f32.mrb[14].mxu1 }
 0x317   : > { %v1148_v25 = vadd.f32 %v1570_v23, %v1020_v21  ;;  %v1142_v26 = vpop.f32.mrb[15].mxu1 }
 0x318   : > { %v1155_v28 = vadd.f32 %v1152_v20, %v1151_v22  ;;  %v1143_v29 = vadd.f32 %v1142_v26, %v1015_v14 }
 0x319   : > { %v1154_v30 = vmul.f32 %v1148_v25, %v1128_v24 }
 0x31a   : > { %v1153_v31 = vmul.f32 %v1143_v29, %v1123_v27 }
 0x31c   : > { %v1156_v32 = vadd.f32 %v1155_v28, %v1153_v31 }
 0x31e   : > { %v1157_v33 = vadd.f32 %v1156_v32, %v1154_v30 }
 0x320   : > { %v1158_v34 = vrot.slane %v1157_v33, 4 }
 0x322   : > { %v1159_v35 = vadd.f32 %v1158_v34, %v1157_v33 }
 0x324   : > { %v1160_v36 = vrot.slane %v1159_v35, 2 }
 0x326   : > { %v1161_v37 = vadd.f32 %v1160_v36, %v1159_v35 }
 0x328   : > { %v1162_v38 = vrot.slane %v1161_v37, 1 }
 0x32a   : > { %v1163_v40 = vadd.f32 %v1162_v38, %v1161_v37 }
 0x32c   : > { %v1166_v41 = vadd.f32 %v1165_v39, %v1163_v40 }
 0x32e   : > { %1167 = vst [vmem:[%s288_s21] sm:$0x1] %v1166_v41 }
 0x32f   : > { %1762 = shalt.err (!%p1759_p3)
}
 0x330   : > { %s1763_s14 = scalar_lea.hbm %s2230_s30, 16  ;;  %s1767_s20 = scalar_lea.hbm %s2279_s7, 32 }
 0x331   : > { %p1764_p4 = scmp.ne.s32.totalorder %s2230_s30, %s1763_s14  ;;  %p1768_p9 = scmp.lt.u32.totalorder %s2230_s30, %s2279_s7 }
 0x332   : > { %p1769_p10 = scmp.lt.u32.totalorder %s1767_s20, %s1763_s14  ;;  %p1771_p12 = scmp.lt.u32.totalorder %s1763_s14, %s2230_s30 }
 0x333   : > { %p1765_p7 = pnand %p1764_p4, %p1893_p5 }
 0x334   : > { %p1770_p11 = por %p1769_p10, %p1768_p9 }
 0x335   : > { %p1766_p8 = pneg %p1765_p7 }
 0x336   : > { %p1772_p13 = por %p1771_p12, %p1770_p11 }
 0x338   : > { %p1773_p0 = pnand %p1772_p13, %p1766_p8 }
 0x33a   : > { %1776 = shalt.err (!%p1773_p0)
}
 0x33b   : > { %1707 = dma.vmem_to_hbm [thread:$0]  (%p1893_p5), %s2232_s22, 16, %s2230_s30, %s1169_s9  }
 0x33c PF: > { %p1713_p1 = scmp.ge.s32.totalorder %s1811_s29, 2  ;;  %s1193_s21 = sand.u32 1, %s1799_s26  }
 0x33d   : > { %s1194_s24 = scalar_lea.sflag [#allocation4], %s1193_s21 }
 0x33e   : > { %p1710_p2 = pnand %p1713_p1, %p1897_p6 }
 0x340   : > { %1794 = dma.done.wait (!%p1710_p2), %s1194_s24, 16  }
 0x341   : > { %1796 = vsyncadd (!%p1710_p2), %s1194_s24, 4294967280  ;;  %p18_p3 = scmp.ge.s32.totalorder %s1881_s8, 4   ;;  %s2286_s26 = smov %s1803_s27 }
 0x342   : > { %s2287_s27 = smov %s1807_s28  ;;  %s2288_s28 = smov %s1891_s11 }
 0x343   : > { %s2289_s29 = smov %s1881_s8  ;;  %20 = sbr.rel (!%p18_p3) target bundleno = 5 (0x5), region = 89 }
 0x34a   :  { %1198 = vsyncpa [#allocation4], 1 }
 0x34b   :  { %1200 = vsyncpa [#allocation4 + $0x1], 1 }

</bundles_post_ra>
